<compile_context>
chip_gen: v7x
topology: tpu7x:2x2x1
jax: 0.10.0
libtpu: 0.0.40
codegen_flags: <defaults>
</compile_context>

<pallas_src>
import functools

import jax
import jax.numpy as jnp
from jax.experimental import pallas as pl
from jax.experimental.pallas import tpu as pltpu


def _inverted_block2_kernel(x_ref, wmap_ref, b1_ref, wpw_ref, b2_ref, *rest,
                            W, has_sel, use_res):
    if has_sel:
        sel_ref, o_ref = rest
    else:
        (o_ref,) = rest

    nb, C, HW = x_ref.shape          # (images per step, channels, H*W)
    _, Cout, P = o_ref.shape         # (images per step, out channels, Ho*Wo)

    # Hoist constant loads / broadcasts out of the per-image loop.
    b1 = jnp.broadcast_to(b1_ref[...], (C, HW))      # folded BN1 shift
    b2 = jnp.broadcast_to(b2_ref[...], (Cout, P))    # folded BN2 shift
    wpw = wpw_ref[...]                               # (Cout, C), BN2 scale pre-folded
    sel = sel_ref[...] if has_sel else None          # (HW, P) stride-2 decimation matrix

    for n in range(nb):
        xf = x_ref[n].astype(jnp.float32)            # (C, H*W), CHW-flat, lane-dense

        # ---- depthwise 3x3: 9 lane-rolled taps (XLU) * masked BN1-scaled weights ----
        # wmap[t] is zero at positions whose tap falls into the zero padding, so the
        # wrapped values produced by the roll never contribute.
        acc = None
        t = 0
        for ky in (-1, 0, 1):
            for kx in (-1, 0, 1):
                off = ky * W + kx
                tap = xf if off == 0 else pltpu.roll(xf, shift=(-off) % HW, axis=1)
                term = tap * wmap_ref[t]
                acc = term if acc is None else acc + term
                t += 1

        h = jnp.clip(acc + b1, 0.0, 6.0)             # BN1 shift + ReLU6

        if has_sel:                                  # stride==2: pick strided positions (MXU)
            h = jnp.dot(h, sel, preferred_element_type=jnp.float32)   # (C, Ho*Wo)

        # ---- pointwise 1x1 conv on the MXU, directly in (Cout, Ho*Wo) layout ----
        # TODO(synk): cast h / wpw to bf16 (f32 accumulation) when reused with larger C/Cout.
        out = jnp.dot(wpw, h, preferred_element_type=jnp.float32) + b2

        if use_res:                                  # stride==1 and Cin==Cout: contiguous add
            out = out + xf

        o_ref[n] = out.astype(o_ref.dtype)


def inverted_block2_pallas(x_nchw, p, *, stride, images_per_step=None):
    """x_nchw: (N, C_in, H, W) float32; returns (N, C_out, Ho, Wo) in NCHW."""
    N, Cin, H, W = x_nchw.shape
    C = p["w_dw"].shape[-1]            # hidden_dim (== ch_in since expand_ratio == 1)
    Cout = p["w_pw"].shape[-1]
    assert Cin == C, "forward only valid for expand_ratio == 1"
    assert stride in (1, 2)
    use_res = (stride == 1 and Cin == Cout)
    Ho = (H + 2 - 3) // stride + 1
    Wo = (W + 2 - 3) // stride + 1
    HW = H * W
    P = Ho * Wo

    # Images per grid step: amortize per-step overhead, keep the block VMEM-small.
    if images_per_step is None:
        per_image_bytes = C * HW * 4
        images_per_step = max(1, min(N, 8, (2 << 20) // max(per_image_bytes, 1)))
    nb = max(1, min(images_per_step, N))
    while N % nb:
        nb -= 1

    # NCHW -> (N, C, H*W): a free reshape (no transpose, no padded HBM copy).
    x_flat = x_nchw.reshape(N, C, HW)

    # Fold BatchNorm (inference) into weights / biases.
    eps = 1e-5
    s1 = p["bn1_gamma"] / jnp.sqrt(p["bn1_var"] + eps)
    b1 = (p["bn1_beta"] - p["bn1_mean"] * s1)[:, None].astype(jnp.float32)   # (C, 1)
    s2 = p["bn2_gamma"] / jnp.sqrt(p["bn2_var"] + eps)
    b2 = (p["bn2_beta"] - p["bn2_mean"] * s2)[:, None].astype(jnp.float32)   # (Cout, 1)
    w_pw_t = (p["w_pw"] * s2[None, :]).T.astype(jnp.float32)                 # (Cout, C)

    # Depthwise weights with BN1 scale folded in, expanded to per-(tap, channel, position)
    # maps whose zeros implement the 'same' zero-padding.
    yy = jnp.arange(H)
    xx = jnp.arange(W)
    wmaps = []
    for ky in (-1, 0, 1):
        for kx in (-1, 0, 1):
            valid = (((yy + ky >= 0) & (yy + ky < H))[:, None] &
                     ((xx + kx >= 0) & (xx + kx < W))[None, :])              # (H, W)
            w_t = p["w_dw"][ky + 1, kx + 1] * s1                             # (C,)
            wmaps.append(w_t[:, None].astype(jnp.float32) *
                         valid.reshape(1, HW).astype(jnp.float32))           # (C, H*W)
    wmap = jnp.stack(wmaps)                                                  # (9, C, H*W)
    # TODO(synk): at large H*W, pass (3,3,C) weights + a (9,H*W) mask instead of the full map.

    args = [x_flat, wmap, b1, w_pw_t, b2]
    in_specs = [
        pl.BlockSpec((nb, C, HW), lambda b: (b, 0, 0)),
        pl.BlockSpec((9, C, HW), lambda b: (0, 0, 0)),
        pl.BlockSpec((C, 1), lambda b: (0, 0)),
        pl.BlockSpec((Cout, C), lambda b: (0, 0)),
        pl.BlockSpec((Cout, 1), lambda b: (0, 0)),
    ]

    has_sel = (stride != 1)
    if has_sel:
        # Selection matrix mapping dense positions (y*W+x at even y,x) -> strided output.
        src = (stride * jnp.arange(Ho)[:, None] * W +
               stride * jnp.arange(Wo)[None, :]).reshape(-1)                 # (P,)
        sel = (jnp.arange(HW)[:, None] == src[None, :]).astype(jnp.float32)  # (HW, P)
        args.append(sel)
        in_specs.append(pl.BlockSpec((HW, P), lambda b: (0, 0)))

    kernel = functools.partial(_inverted_block2_kernel, W=W,
                               has_sel=has_sel, use_res=use_res)

    out_flat = pl.pallas_call(
        kernel,
        out_shape=jax.ShapeDtypeStruct((N, Cout, P), x_nchw.dtype),
        grid=(N // nb,),
        in_specs=in_specs,
        out_specs=pl.BlockSpec((nb, Cout, P), lambda b: (b, 0, 0)),
        compiler_params=pltpu.CompilerParams(dimension_semantics=("parallel",)),
    )(*args)

    # (N, Cout, Ho*Wo) -> NCHW with a free reshape (no transpose).
    return out_flat.reshape(N, Cout, Ho, Wo)


def inverted_block2_ref(x, p, *, stride):
    """Pure-JAX reference in NCHW, mirroring the PyTorch forward (eval-mode BN)."""
    C = p["w_dw"].shape[-1]
    Cout = p["w_pw"].shape[-1]
    eps = 1e-5
    w_dw_oihw = jnp.transpose(p["w_dw"], (2, 0, 1))[:, None, :, :]   # (C,1,3,3)
    y = jax.lax.conv_general_dilated(
        x, w_dw_oihw, window_strides=(stride, stride),
        padding=((1, 1), (1, 1)), feature_group_count=C,
        dimension_numbers=("NCHW", "OIHW", "NCHW"))
    s1 = p["bn1_gamma"] / jnp.sqrt(p["bn1_var"] + eps)
    y = y * s1[None, :, None, None] + (p["bn1_beta"] - p["bn1_mean"] * s1)[None, :, None, None]
    y = jnp.clip(y, 0.0, 6.0)
    w_pw_oihw = jnp.transpose(p["w_pw"], (1, 0))[:, :, None, None]   # (Cout,C,1,1)
    y = jax.lax.conv_general_dilated(
        y, w_pw_oihw, (1, 1), ((0, 0), (0, 0)),
        dimension_numbers=("NCHW", "OIHW", "NCHW"))
    s2 = p["bn2_gamma"] / jnp.sqrt(p["bn2_var"] + eps)
    y = y * s2[None, :, None, None] + (p["bn2_beta"] - p["bn2_mean"] * s2)[None, :, None, None]
    if stride == 1 and x.shape[1] == Cout:
        y = x + y
    return y


def make_params(key, ch_in, ch_out, expand_ratio=1):
    assert expand_ratio == 1  # TODO(synk): expand_ratio != 1 path is dead code in the PyTorch module
    hidden = ch_in * expand_ratio
    ks = jax.random.split(key, 10)
    return {
        "w_dw": jax.random.normal(ks[0], (3, 3, hidden), jnp.float32) * 0.2,
        "w_pw": jax.random.normal(ks[1], (hidden, ch_out), jnp.float32) * 0.2,
        "bn1_gamma": 1.0 + 0.1 * jax.random.normal(ks[2], (hidden,), jnp.float32),
        "bn1_beta": 0.1 * jax.random.normal(ks[3], (hidden,), jnp.float32),
        "bn1_mean": 0.1 * jax.random.normal(ks[4], (hidden,), jnp.float32),
        "bn1_var": jnp.abs(jax.random.normal(ks[5], (hidden,), jnp.float32)) + 0.5,
        "bn2_gamma": 1.0 + 0.1 * jax.random.normal(ks[6], (ch_out,), jnp.float32),
        "bn2_beta": 0.1 * jax.random.normal(ks[7], (ch_out,), jnp.float32),
        "bn2_mean": 0.1 * jax.random.normal(ks[8], (ch_out,), jnp.float32),
        "bn2_var": jnp.abs(jax.random.normal(ks[9], (ch_out,), jnp.float32)) + 0.5,
    }


if __name__ == "__main__":
    key = jax.random.PRNGKey(0)
    kx, kp1, kp2 = jax.random.split(key, 3)
    kp3 = jax.random.fold_in(kp2, 7)

    N, CH_IN, H, W = 2, 16, 16, 16
    x = jax.random.normal(kx, (N, CH_IN, H, W), jnp.float32)

    # Case 1: stride=1, ch_in == ch_out  -> residual connection exercised.
    p1 = make_params(kp1, CH_IN, CH_IN, expand_ratio=1)
    out1 = jax.block_until_ready(inverted_block2_pallas(x, p1, stride=1))
    ref1 = inverted_block2_ref(x, p1, stride=1)
    assert out1.shape == (N, CH_IN, H, W)
    assert jnp.allclose(out1, ref1, atol=1e-4, rtol=1e-4)

    # Case 2: stride=1, ch_in != ch_out -> no residual.
    CH_OUT = 32
    p2 = make_params(kp2, CH_IN, CH_OUT, expand_ratio=1)
    out2 = jax.block_until_ready(inverted_block2_pallas(x, p2, stride=1))
    ref2 = inverted_block2_ref(x, p2, stride=1)
    assert out2.shape == (N, CH_OUT, H, W)
    assert jnp.allclose(out2, ref2, atol=1e-4, rtol=1e-4)

    # Case 3: stride=2 downsampling path (no residual by construction).
    p3 = make_params(kp3, CH_IN, CH_OUT, expand_ratio=1)
    out3 = jax.block_until_ready(inverted_block2_pallas(x, p3, stride=2))
    ref3 = inverted_block2_ref(x, p3, stride=2)
    assert out3.shape == (N, CH_OUT, H // 2, W // 2)
    assert jnp.allclose(out3, ref3, atol=1e-4, rtol=1e-4)

    print("KERNEL_OK")
</pallas_src>

<mosaic_0001>
module attributes {stable_mosaic.version = 11 : i64} {
  func.func @_inverted_block2_kernel(%arg0: i32, %arg1: memref<2x16x256xf32, #tpu.memory_space<vmem>>, %arg2: memref<9x16x256xf32, #tpu.memory_space<vmem>>, %arg3: memref<16x1xf32, #tpu.memory_space<vmem>>, %arg4: memref<16x16xf32, #tpu.memory_space<vmem>>, %arg5: memref<16x1xf32, #tpu.memory_space<vmem>>, %arg6: memref<2x16x256xf32, #tpu.memory_space<vmem>>) attributes {dimension_semantics = [#tpu.dimension_semantics<parallel>], iteration_bounds = array<i64: 1>, scalar_prefetch = 0 : i64, scratch_operands = 0 : i64, tpu.core_type = #tpu.core_type<tc>, window_params = [{transform_indices = @transform_0, window_bounds = array<i64: 2, 16, 256>}, {pipeline_mode = #tpu.pipeline_mode<synchronous>, transform_indices = @transform_1, window_bounds = array<i64: 9, 16, 256>}, {pipeline_mode = #tpu.pipeline_mode<synchronous>, transform_indices = @transform_2, window_bounds = array<i64: 16, 1>}, {pipeline_mode = #tpu.pipeline_mode<synchronous>, transform_indices = @transform_3, window_bounds = array<i64: 16, 16>}, {pipeline_mode = #tpu.pipeline_mode<synchronous>, transform_indices = @transform_4, window_bounds = array<i64: 16, 1>}, {transform_indices = @transform_5, window_bounds = array<i64: 2, 16, 256>}]} {
    %c0 = arith.constant 0 : index
    %c0_0 = arith.constant 0 : index
    %0 = vector.load %arg3[%c0, %c0_0] : memref<16x1xf32, #tpu.memory_space<vmem>>, vector<16x1xf32>
    %1 = vector.shape_cast %0 : vector<16x1xf32> to vector<16x1xf32>
    %2 = vector.broadcast %1 : vector<16x1xf32> to vector<16x256xf32>
    %c0_1 = arith.constant 0 : index
    %c0_2 = arith.constant 0 : index
    %3 = vector.load %arg5[%c0_1, %c0_2] : memref<16x1xf32, #tpu.memory_space<vmem>>, vector<16x1xf32>
    %4 = vector.shape_cast %3 : vector<16x1xf32> to vector<16x1xf32>
    %5 = vector.broadcast %4 : vector<16x1xf32> to vector<16x256xf32>
    %c0_3 = arith.constant 0 : index
    %c0_4 = arith.constant 0 : index
    %6 = vector.load %arg4[%c0_3, %c0_4] : memref<16x16xf32, #tpu.memory_space<vmem>>, vector<16x16xf32>
    %c0_5 = arith.constant 0 : index
    %c0_6 = arith.constant 0 : index
    %c0_7 = arith.constant 0 : index
    %7 = vector.load %arg1[%c0_5, %c0_6, %c0_7] : memref<2x16x256xf32, #tpu.memory_space<vmem>>, vector<1x16x256xf32>
    %8 = vector.shape_cast %7 : vector<1x16x256xf32> to vector<16x256xf32>
    %c17_i32 = arith.constant 17 : i32
    %9 = tpu.dynamic_rotate %8 by %c17_i32 dim 1 : vector<16x256xf32>, i32 -> vector<16x256xf32>
    %c0_8 = arith.constant 0 : index
    %c0_9 = arith.constant 0 : index
    %c0_10 = arith.constant 0 : index
    %10 = vector.load %arg2[%c0_8, %c0_9, %c0_10] : memref<9x16x256xf32, #tpu.memory_space<vmem>>, vector<1x16x256xf32>
    %11 = vector.shape_cast %10 : vector<1x16x256xf32> to vector<16x256xf32>
    %12 = arith.mulf %9, %11 : vector<16x256xf32>
    %c16_i32 = arith.constant 16 : i32
    %13 = tpu.dynamic_rotate %8 by %c16_i32 dim 1 : vector<16x256xf32>, i32 -> vector<16x256xf32>
    %c1 = arith.constant 1 : index
    %c0_11 = arith.constant 0 : index
    %c0_12 = arith.constant 0 : index
    %14 = vector.load %arg2[%c1, %c0_11, %c0_12] : memref<9x16x256xf32, #tpu.memory_space<vmem>>, vector<1x16x256xf32>
    %15 = vector.shape_cast %14 : vector<1x16x256xf32> to vector<16x256xf32>
    %16 = arith.mulf %13, %15 : vector<16x256xf32>
    %17 = arith.addf %12, %16 : vector<16x256xf32>
    %c15_i32 = arith.constant 15 : i32
    %18 = tpu.dynamic_rotate %8 by %c15_i32 dim 1 : vector<16x256xf32>, i32 -> vector<16x256xf32>
    %c2 = arith.constant 2 : index
    %c0_13 = arith.constant 0 : index
    %c0_14 = arith.constant 0 : index
    %19 = vector.load %arg2[%c2, %c0_13, %c0_14] : memref<9x16x256xf32, #tpu.memory_space<vmem>>, vector<1x16x256xf32>
    %20 = vector.shape_cast %19 : vector<1x16x256xf32> to vector<16x256xf32>
    %21 = arith.mulf %18, %20 : vector<16x256xf32>
    %22 = arith.addf %17, %21 : vector<16x256xf32>
    %c1_i32 = arith.constant 1 : i32
    %23 = tpu.dynamic_rotate %8 by %c1_i32 dim 1 : vector<16x256xf32>, i32 -> vector<16x256xf32>
    %c3 = arith.constant 3 : index
    %c0_15 = arith.constant 0 : index
    %c0_16 = arith.constant 0 : index
    %24 = vector.load %arg2[%c3, %c0_15, %c0_16] : memref<9x16x256xf32, #tpu.memory_space<vmem>>, vector<1x16x256xf32>
    %25 = vector.shape_cast %24 : vector<1x16x256xf32> to vector<16x256xf32>
    %26 = arith.mulf %23, %25 : vector<16x256xf32>
    %27 = arith.addf %22, %26 : vector<16x256xf32>
    %c4 = arith.constant 4 : index
    %c0_17 = arith.constant 0 : index
    %c0_18 = arith.constant 0 : index
    %28 = vector.load %arg2[%c4, %c0_17, %c0_18] : memref<9x16x256xf32, #tpu.memory_space<vmem>>, vector<1x16x256xf32>
    %29 = vector.shape_cast %28 : vector<1x16x256xf32> to vector<16x256xf32>
    %30 = arith.mulf %8, %29 : vector<16x256xf32>
    %31 = arith.addf %27, %30 : vector<16x256xf32>
    %c255_i32 = arith.constant 255 : i32
    %32 = tpu.dynamic_rotate %8 by %c255_i32 dim 1 : vector<16x256xf32>, i32 -> vector<16x256xf32>
    %c5 = arith.constant 5 : index
    %c0_19 = arith.constant 0 : index
    %c0_20 = arith.constant 0 : index
    %33 = vector.load %arg2[%c5, %c0_19, %c0_20] : memref<9x16x256xf32, #tpu.memory_space<vmem>>, vector<1x16x256xf32>
    %34 = vector.shape_cast %33 : vector<1x16x256xf32> to vector<16x256xf32>
    %35 = arith.mulf %32, %34 : vector<16x256xf32>
    %36 = arith.addf %31, %35 : vector<16x256xf32>
    %c241_i32 = arith.constant 241 : i32
    %37 = tpu.dynamic_rotate %8 by %c241_i32 dim 1 : vector<16x256xf32>, i32 -> vector<16x256xf32>
    %c6 = arith.constant 6 : index
    %c0_21 = arith.constant 0 : index
    %c0_22 = arith.constant 0 : index
    %38 = vector.load %arg2[%c6, %c0_21, %c0_22] : memref<9x16x256xf32, #tpu.memory_space<vmem>>, vector<1x16x256xf32>
    %39 = vector.shape_cast %38 : vector<1x16x256xf32> to vector<16x256xf32>
    %40 = arith.mulf %37, %39 : vector<16x256xf32>
    %41 = arith.addf %36, %40 : vector<16x256xf32>
    %c240_i32 = arith.constant 240 : i32
    %42 = tpu.dynamic_rotate %8 by %c240_i32 dim 1 : vector<16x256xf32>, i32 -> vector<16x256xf32>
    %c7 = arith.constant 7 : index
    %c0_23 = arith.constant 0 : index
    %c0_24 = arith.constant 0 : index
    %43 = vector.load %arg2[%c7, %c0_23, %c0_24] : memref<9x16x256xf32, #tpu.memory_space<vmem>>, vector<1x16x256xf32>
    %44 = vector.shape_cast %43 : vector<1x16x256xf32> to vector<16x256xf32>
    %45 = arith.mulf %42, %44 : vector<16x256xf32>
    %46 = arith.addf %41, %45 : vector<16x256xf32>
    %c239_i32 = arith.constant 239 : i32
    %47 = tpu.dynamic_rotate %8 by %c239_i32 dim 1 : vector<16x256xf32>, i32 -> vector<16x256xf32>
    %c8 = arith.constant 8 : index
    %c0_25 = arith.constant 0 : index
    %c0_26 = arith.constant 0 : index
    %48 = vector.load %arg2[%c8, %c0_25, %c0_26] : memref<9x16x256xf32, #tpu.memory_space<vmem>>, vector<1x16x256xf32>
    %49 = vector.shape_cast %48 : vector<1x16x256xf32> to vector<16x256xf32>
    %50 = arith.mulf %47, %49 : vector<16x256xf32>
    %51 = arith.addf %46, %50 : vector<16x256xf32>
    %52 = arith.addf %51, %2 : vector<16x256xf32>
    %cst = arith.constant 0.000000e+00 : f32
    %cst_27 = arith.constant 6.000000e+00 : f32
    %53 = vector.broadcast %cst : f32 to vector<16x256xf32>
    %54 = arith.maximumf %53, %52 : vector<16x256xf32>
    %55 = vector.broadcast %cst_27 : f32 to vector<16x256xf32>
    %56 = arith.minimumf %55, %54 : vector<16x256xf32>
    %cst_28 = arith.constant dense<0.000000e+00> : vector<16x256xf32>
    %57 = tpu.matmul %6, %56, %cst_28 {dimension_numbers = #tpu.dot_dimension_numbers<[1], [0], [0], [1], [0, 0, 1, 1], [], []>} : vector<16x16xf32>, vector<16x256xf32>, vector<16x256xf32> -> vector<16x256xf32>
    %58 = arith.addf %57, %5 : vector<16x256xf32>
    %59 = arith.addf %58, %8 : vector<16x256xf32>
    %c0_29 = arith.constant 0 : index
    %c0_30 = arith.constant 0 : index
    %c0_31 = arith.constant 0 : index
    %60 = vector.load %arg6[%c0_29, %c0_30, %c0_31] : memref<2x16x256xf32, #tpu.memory_space<vmem>>, vector<1x16x256xf32>
    %61 = vector.shape_cast %60 : vector<1x16x256xf32> to vector<16x256xf32>
    %62 = vector.shape_cast %59 : vector<16x256xf32> to vector<1x16x256xf32>
    tpu.vector_store %arg6[%c0_29, %c0_30, %c0_31], %62 {strides = array<i32>} : memref<2x16x256xf32, #tpu.memory_space<vmem>>, vector<1x16x256xf32>,
    %c1_32 = arith.constant 1 : index
    %c0_33 = arith.constant 0 : index
    %c0_34 = arith.constant 0 : index
    %63 = vector.load %arg1[%c1_32, %c0_33, %c0_34] : memref<2x16x256xf32, #tpu.memory_space<vmem>>, vector<1x16x256xf32>
    %64 = vector.shape_cast %63 : vector<1x16x256xf32> to vector<16x256xf32>
    %c17_i32_35 = arith.constant 17 : i32
    %65 = tpu.dynamic_rotate %64 by %c17_i32_35 dim 1 : vector<16x256xf32>, i32 -> vector<16x256xf32>
    %c0_36 = arith.constant 0 : index
    %c0_37 = arith.constant 0 : index
    %c0_38 = arith.constant 0 : index
    %66 = vector.load %arg2[%c0_36, %c0_37, %c0_38] : memref<9x16x256xf32, #tpu.memory_space<vmem>>, vector<1x16x256xf32>
    %67 = vector.shape_cast %66 : vector<1x16x256xf32> to vector<16x256xf32>
    %68 = arith.mulf %65, %67 : vector<16x256xf32>
    %c16_i32_39 = arith.constant 16 : i32
    %69 = tpu.dynamic_rotate %64 by %c16_i32_39 dim 1 : vector<16x256xf32>, i32 -> vector<16x256xf32>
    %c1_40 = arith.constant 1 : index
    %c0_41 = arith.constant 0 : index
    %c0_42 = arith.constant 0 : index
    %70 = vector.load %arg2[%c1_40, %c0_41, %c0_42] : memref<9x16x256xf32, #tpu.memory_space<vmem>>, vector<1x16x256xf32>
    %71 = vector.shape_cast %70 : vector<1x16x256xf32> to vector<16x256xf32>
    %72 = arith.mulf %69, %71 : vector<16x256xf32>
    %73 = arith.addf %68, %72 : vector<16x256xf32>
    %c15_i32_43 = arith.constant 15 : i32
    %74 = tpu.dynamic_rotate %64 by %c15_i32_43 dim 1 : vector<16x256xf32>, i32 -> vector<16x256xf32>
    %c2_44 = arith.constant 2 : index
    %c0_45 = arith.constant 0 : index
    %c0_46 = arith.constant 0 : index
    %75 = vector.load %arg2[%c2_44, %c0_45, %c0_46] : memref<9x16x256xf32, #tpu.memory_space<vmem>>, vector<1x16x256xf32>
    %76 = vector.shape_cast %75 : vector<1x16x256xf32> to vector<16x256xf32>
    %77 = arith.mulf %74, %76 : vector<16x256xf32>
    %78 = arith.addf %73, %77 : vector<16x256xf32>
    %c1_i32_47 = arith.constant 1 : i32
    %79 = tpu.dynamic_rotate %64 by %c1_i32_47 dim 1 : vector<16x256xf32>, i32 -> vector<16x256xf32>
    %c3_48 = arith.constant 3 : index
    %c0_49 = arith.constant 0 : index
    %c0_50 = arith.constant 0 : index
    %80 = vector.load %arg2[%c3_48, %c0_49, %c0_50] : memref<9x16x256xf32, #tpu.memory_space<vmem>>, vector<1x16x256xf32>
    %81 = vector.shape_cast %80 : vector<1x16x256xf32> to vector<16x256xf32>
    %82 = arith.mulf %79, %81 : vector<16x256xf32>
    %83 = arith.addf %78, %82 : vector<16x256xf32>
    %c4_51 = arith.constant 4 : index
    %c0_52 = arith.constant 0 : index
    %c0_53 = arith.constant 0 : index
    %84 = vector.load %arg2[%c4_51, %c0_52, %c0_53] : memref<9x16x256xf32, #tpu.memory_space<vmem>>, vector<1x16x256xf32>
    %85 = vector.shape_cast %84 : vector<1x16x256xf32> to vector<16x256xf32>
    %86 = arith.mulf %64, %85 : vector<16x256xf32>
    %87 = arith.addf %83, %86 : vector<16x256xf32>
    %c255_i32_54 = arith.constant 255 : i32
    %88 = tpu.dynamic_rotate %64 by %c255_i32_54 dim 1 : vector<16x256xf32>, i32 -> vector<16x256xf32>
    %c5_55 = arith.constant 5 : index
    %c0_56 = arith.constant 0 : index
    %c0_57 = arith.constant 0 : index
    %89 = vector.load %arg2[%c5_55, %c0_56, %c0_57] : memref<9x16x256xf32, #tpu.memory_space<vmem>>, vector<1x16x256xf32>
    %90 = vector.shape_cast %89 : vector<1x16x256xf32> to vector<16x256xf32>
    %91 = arith.mulf %88, %90 : vector<16x256xf32>
    %92 = arith.addf %87, %91 : vector<16x256xf32>
    %c241_i32_58 = arith.constant 241 : i32
    %93 = tpu.dynamic_rotate %64 by %c241_i32_58 dim 1 : vector<16x256xf32>, i32 -> vector<16x256xf32>
    %c6_59 = arith.constant 6 : index
    %c0_60 = arith.constant 0 : index
    %c0_61 = arith.constant 0 : index
    %94 = vector.load %arg2[%c6_59, %c0_60, %c0_61] : memref<9x16x256xf32, #tpu.memory_space<vmem>>, vector<1x16x256xf32>
    %95 = vector.shape_cast %94 : vector<1x16x256xf32> to vector<16x256xf32>
    %96 = arith.mulf %93, %95 : vector<16x256xf32>
    %97 = arith.addf %92, %96 : vector<16x256xf32>
    %c240_i32_62 = arith.constant 240 : i32
    %98 = tpu.dynamic_rotate %64 by %c240_i32_62 dim 1 : vector<16x256xf32>, i32 -> vector<16x256xf32>
    %c7_63 = arith.constant 7 : index
    %c0_64 = arith.constant 0 : index
    %c0_65 = arith.constant 0 : index
    %99 = vector.load %arg2[%c7_63, %c0_64, %c0_65] : memref<9x16x256xf32, #tpu.memory_space<vmem>>, vector<1x16x256xf32>
    %100 = vector.shape_cast %99 : vector<1x16x256xf32> to vector<16x256xf32>
    %101 = arith.mulf %98, %100 : vector<16x256xf32>
    %102 = arith.addf %97, %101 : vector<16x256xf32>
    %c239_i32_66 = arith.constant 239 : i32
    %103 = tpu.dynamic_rotate %64 by %c239_i32_66 dim 1 : vector<16x256xf32>, i32 -> vector<16x256xf32>
    %c8_67 = arith.constant 8 : index
    %c0_68 = arith.constant 0 : index
    %c0_69 = arith.constant 0 : index
    %104 = vector.load %arg2[%c8_67, %c0_68, %c0_69] : memref<9x16x256xf32, #tpu.memory_space<vmem>>, vector<1x16x256xf32>
    %105 = vector.shape_cast %104 : vector<1x16x256xf32> to vector<16x256xf32>
    %106 = arith.mulf %103, %105 : vector<16x256xf32>
    %107 = arith.addf %102, %106 : vector<16x256xf32>
    %108 = arith.addf %107, %2 : vector<16x256xf32>
    %cst_70 = arith.constant 0.000000e+00 : f32
    %cst_71 = arith.constant 6.000000e+00 : f32
    %109 = vector.broadcast %cst_70 : f32 to vector<16x256xf32>
    %110 = arith.maximumf %109, %108 : vector<16x256xf32>
    %111 = vector.broadcast %cst_71 : f32 to vector<16x256xf32>
    %112 = arith.minimumf %111, %110 : vector<16x256xf32>
    %cst_72 = arith.constant dense<0.000000e+00> : vector<16x256xf32>
    %113 = tpu.matmul %6, %112, %cst_72 {dimension_numbers = #tpu.dot_dimension_numbers<[1], [0], [0], [1], [0, 0, 1, 1], [], []>} : vector<16x16xf32>, vector<16x256xf32>, vector<16x256xf32> -> vector<16x256xf32>
    %114 = arith.addf %113, %5 : vector<16x256xf32>
    %115 = arith.addf %114, %64 : vector<16x256xf32>
    %c1_73 = arith.constant 1 : index
    %c0_74 = arith.constant 0 : index
    %c0_75 = arith.constant 0 : index
    %116 = vector.load %arg6[%c1_73, %c0_74, %c0_75] : memref<2x16x256xf32, #tpu.memory_space<vmem>>, vector<1x16x256xf32>
    %117 = vector.shape_cast %116 : vector<1x16x256xf32> to vector<16x256xf32>
    %118 = vector.shape_cast %115 : vector<16x256xf32> to vector<1x16x256xf32>
    tpu.vector_store %arg6[%c1_73, %c0_74, %c0_75], %118 {strides = array<i32>} : memref<2x16x256xf32, #tpu.memory_space<vmem>>, vector<1x16x256xf32>,
    return
  }
  func.func @transform_0(%arg0: i32) -> (i32, i32, i32) {
    %c0_i32 = arith.constant 0 : i32
    %c0_i32_0 = arith.constant 0 : i32
    %c0_i32_1 = arith.constant 0 : i32
    return %arg0, %c0_i32, %c0_i32_0 : i32, i32, i32
  }
  func.func @transform_1(%arg0: i32) -> (i32, i32, i32) {
    %c0_i32 = arith.constant 0 : i32
    %c0_i32_0 = arith.constant 0 : i32
    %c0_i32_1 = arith.constant 0 : i32
    %c0_i32_2 = arith.constant 0 : i32
    return %c0_i32, %c0_i32_0, %c0_i32_1 : i32, i32, i32
  }
  func.func @transform_2(%arg0: i32) -> (i32, i32) {
    %c0_i32 = arith.constant 0 : i32
    %c0_i32_0 = arith.constant 0 : i32
    %c0_i32_1 = arith.constant 0 : i32
    return %c0_i32, %c0_i32_0 : i32, i32
  }
  func.func @transform_3(%arg0: i32) -> (i32, i32) {
    %c0_i32 = arith.constant 0 : i32
    %c0_i32_0 = arith.constant 0 : i32
    %c0_i32_1 = arith.constant 0 : i32
    return %c0_i32, %c0_i32_0 : i32, i32
  }
  func.func @transform_4(%arg0: i32) -> (i32, i32) {
    %c0_i32 = arith.constant 0 : i32
    %c0_i32_0 = arith.constant 0 : i32
    %c0_i32_1 = arith.constant 0 : i32
    return %c0_i32, %c0_i32_0 : i32, i32
  }
  func.func @transform_5(%arg0: i32) -> (i32, i32, i32) {
    %c0_i32 = arith.constant 0 : i32
    %c0_i32_0 = arith.constant 0 : i32
    %c0_i32_1 = arith.constant 0 : i32
    return %arg0, %c0_i32, %c0_i32_0 : i32, i32, i32
  }
}

</mosaic_0001>

<bundles_post_ra>
// kernel: tpu_custom_call.1
= control target key start
LH: loop header
LB: loop body
LE: loop exit
PB: predicated region body
PF: predicated region fallthrough
CT: control target
= control target key end

     0   :  { %10 = vsyncpa [#allocation3], 0  ;;  %s1283_s0 = inlined_call_operand.hbm [shape: f32[2,16,256], index: 0, kind: input, shape index: {}]   ;;  %s1284_s1 = inlined_call_operand.hbm [shape: f32[9,16,256], index: 1, kind: input, shape index: {}]   ;;  %s1285_s2 = inlined_call_operand.vmem [shape: f32[16,1], index: 2, kind: input, shape index: {}]   ;;  %s1286_s3 = inlined_call_operand.vmem [shape: f32[16,16], index: 3, kind: input, shape index: {}]   ;;  %s1287_s4 = inlined_call_operand.vmem [shape: f32[16,1], index: 4, kind: input, shape index: {}]   ;;  %s1288_s5 = inlined_call_operand.hbm [shape: f32[2,16,256], index: 5, kind: output, shape index: {}]  }
   0x1   :  { %11 = vsyncpa [#allocation6], 0 }
   0x2   :  { %12 = vsyncpa [#allocation4], 0  ;;  %s822_s18 = smov [#allocation2]   ;;  %s750_s22 = scalar_lea.hbm %s1283_s0, 1024 }
   0x3   :  { %s18_s19 = sshll.u32 %s822_s18, 4  ;;  %p751_p0 = scmp.ne.s32.totalorder %s1283_s0, %s750_s22  ;;  %s19_s19 = int_to_ptr.vmem [resolvable:$true] %s18_s19 }
   0x4   :  { %p754_p1 = scmp.lt.u32.totalorder %s750_s22, %s1283_s0 }
   0x6   :  { %p756_p2 = pnand %p754_p1, %p751_p0 }
   0x8   :  { %759 = shalt.err (!%p756_p2)
}
   0x9   :  { %s760_s27 = scalar_lea.vmem %s19_s19, 1024  ;;  %p765_p4 = scmp.lt.s32.totalorder %s19_s19, %s19_s19 }
   0xa   :  { %p761_p3 = scmp.ne.s32.totalorder %s19_s19, %s760_s27  ;;  %p766_p5 = scmp.lt.s32.totalorder %s760_s27, %s760_s27 }
   0xc   :  { %p767_p6 = por %p766_p5, %p765_p4 }
   0xe   :  { %p768_p7 = pnand %p767_p6, %p761_p3 }
  0x10   :  { %771 = shalt.err (!%p768_p7)
}
  0x11   :  { %s823_s28 = smov 256   ;;  %s824_s29 = smov 16  }
  0x12   :  { %24 = dma.hbm_to_vmem [thread:$0]  %s1283_s0, 1024, %s19_s19, [#allocation3], %s823_s28, %s823_s28, %s824_s29  }
  0x13   :  { %s825_s7 = smov [#allocation5]   ;;  %s772_s11 = scalar_lea.hbm %s1284_s1, 4608 }
  0x14   :  { %s30_s8 = sshll.u32 %s825_s7, 4  ;;  %p773_p8 = scmp.ne.s32.totalorder %s1284_s1, %s772_s11  ;;  %s31_s8 = int_to_ptr.vmem [resolvable:$true] %s30_s8 }
  0x15   :  { %p776_p9 = scmp.lt.u32.totalorder %s772_s11, %s1284_s1 }
  0x17   :  { %p778_p10 = pnand %p776_p9, %p773_p8 }
  0x19   :  { %781 = shalt.err (!%p778_p10)
}
  0x1a   :  { %s782_s16 = scalar_lea.vmem %s31_s8, 4608  ;;  %p787_p12 = scmp.lt.s32.totalorder %s31_s8, %s31_s8 }
  0x1b   :  { %p783_p11 = scmp.ne.s32.totalorder %s31_s8, %s782_s16  ;;  %p788_p13 = scmp.lt.s32.totalorder %s782_s16, %s782_s16 }
  0x1d   :  { %p789_p0 = por %p788_p13, %p787_p12 }
  0x1f   :  { %p790_p1 = pnand %p789_p0, %p783_p11 }
  0x21   :  { %793 = shalt.err (!%p790_p1)
}
  0x22   :  { %36 = dma.hbm_to_vmem [thread:$0]  %s1284_s1, 4608, %s31_s8, [#allocation6], %s823_s28, %s823_s28, %s824_s29  }
  0x23   :  { %816 = dma.done.wait [#allocation3], 1024  }
  0x24   :  { %817 = vsyncadd [#allocation3], 4294966272 }
  0x25   :  { %818 = dma.done.wait [#allocation6], 4608  }
  0x26   :  { %819 = vsyncadd [#allocation6], 4294962688  ;;  %v826_v0 = vmov 0   ;;  %v896_v1 = vld [vmem:[#allocation2 + $0x8] sm:$0xff]  ;;  %v898_v2 = vld [vmem:[#allocation2] sm:$0xff]  ;;  %s827_s18 = smov 17   ;;  %v87_v11 = vlaneseq }
  0x27   :  { %749 = vset.pattern.permute.xlu1 %v826_v0  ;;  %748 = vset.pattern.permute.xlu0 %v826_v0  ;;  %v902_v3 = vld [vmem:[#allocation2 + $0x18] sm:$0xff]  ;;  %v904_v4 = vld [vmem:[#allocation2 + $0x10] sm:$0xff]  ;;  %v918_v6 = vld [vmem:[#allocation2 + $0x20] sm:$0xff]  ;;  %s828_s1 = smov 15   ;;  %s829_s19 = smov 1   ;;  %v1289_v61 = vmov 0.0  }
  0x28   :  { %83 = vrot.lane.b32.xlu1 %v896_v1, %s827_s18  ;;  %79 = vrot.lane.b32.xlu0 %v898_v2, %s827_s18  ;;  %v916_v5 = vld [vmem:[#allocation2 + $0x30] sm:$0xff]  ;;  %1296 = vst [vmem:[#allocation12_spill] sm:$0xff] %v918_v6  ;;  %v922_v7 = vld [vmem:[#allocation2 + $0x38] sm:$0xff]  ;;  %v924_v8 = vld [vmem:[#allocation2 + $0x28] sm:$0xff]  ;;  %s830_s20 = smov 127   ;;  %s831_s21 = smov 113  }
  0x29   :  { %1295 = vst [vmem:[#allocation11_spill] sm:$0xff] %v916_v5  ;;  %1297 = vst [vmem:[#allocation13_spill] sm:$0xff] %v922_v7  ;;  %v50_v9 = vld [vmem:[%s1285_s2 + $0x8] sm:$0xff]  ;;  %v49_v10 = vld [vmem:[%s1285_s2] sm:$0xff]  ;;  %s832_s26 = smov 112   ;;  %v980_v12 = vand.u32 127, %v87_v11  ;;  %380 = vmatprep.mubr.f32.mxu0 %v1289_v61  ;;  %682 = vmatprep.mubr.f32.mxu1 %v1289_v61 }
  0x2a   :  { %1298 = vst [vmem:[#allocation14_spill] sm:$0xff] %v924_v8  ;;  %s833_s2 = smov 111   ;;  %v94_v21 = vld [vmem:[#allocation5] sm:$0xff]  ;;  %v95_v24 = vld [vmem:[#allocation5 + $0x8] sm:$0xff]  ;;  %v96_v25 = vld [vmem:[#allocation5 + $0x10] sm:$0xff]  ;;  %vm309_vm8 = vcmask 130048  }
  0x2b   :  { %vm89_vm0 = vcmp.lt.s32.totalorder %v980_v12, 17  ;;  %v97_v26 = vld [vmem:[#allocation5 + $0x18] sm:$0xff]  ;;  %vm110_vm1 = vcmp.lt.s32.totalorder %v980_v12, 16  ;;  %v118_v27 = vld [vmem:[#allocation5 + $0x30] sm:$0xff]  ;;  %v116_v29 = vld [vmem:[#allocation5 + $0x20] sm:$0xff]  ;;  %vm136_vm2 = vcmp.lt.s32.totalorder %v980_v12, 15 }
  0x2c   :  { %85 = vrot.lane.b32.xlu1 %v902_v3, %s827_s18  ;;  %81 = vrot.lane.b32.xlu0 %v904_v4, %s827_s18  ;;  %v119_v28 = vld [vmem:[#allocation5 + $0x38] sm:$0xff]  ;;  %v117_v30 = vld [vmem:[#allocation5 + $0x28] sm:$0xff]  ;;  %v61_v45 = vld [vmem:[%s1287_s4] sm:$0xff]  ;;  %vm162_vm3 = vcmp.lt.s32.totalorder %v980_v12, 1  ;;  %vm201_vm4 = vcmp.lt.s32.totalorder %v980_v12, 127  ;;  %vm227_vm5 = vcmp.lt.s32.totalorder %v980_v12, 113 }
  0x2d   :  { %v62_v52 = vld [vmem:[%s1287_s4 + $0x8] sm:$0xff]  ;;  %v209_v61 = vld [vmem:[#allocation5 + $0xb0] sm:$0xff]  ;;  %vm253_vm6 = vcmp.lt.s32.totalorder %v980_v12, 112  ;;  %vm279_vm7 = vcmp.lt.s32.totalorder %v980_v12, 111 }
  0x30   :  { %104 = vrot.lane.b32.xlu1 %v904_v4, %s824_s29  ;;  %102 = vrot.lane.b32.xlu0 %v898_v2, %s824_s29 }
  0x34   :  { %108 = vrot.lane.b32.xlu1 %v902_v3, %s824_s29  ;;  %106 = vrot.lane.b32.xlu0 %v896_v1, %s824_s29 }
  0x38   :  { %408 = vrot.lane.b32.xlu1 %v916_v5, %s827_s18  ;;  %406 = vrot.lane.b32.xlu0 %v918_v6, %s827_s18 }
  0x3c   :  { %412 = vrot.lane.b32.xlu1 %v922_v7, %s827_s18  ;;  %410 = vrot.lane.b32.xlu0 %v924_v8, %s827_s18 }
  0x40   :  { %428 = vrot.lane.b32.xlu1 %v916_v5, %s824_s29  ;;  %426 = vrot.lane.b32.xlu0 %v918_v6, %s824_s29 }
  0x44   :  { %432 = vrot.lane.b32.xlu1 %v922_v7, %s824_s29  ;;  %430 = vrot.lane.b32.xlu0 %v924_v8, %s824_s29 }
  0x48   :  { %130 = vrot.lane.b32.xlu1 %v904_v4, %s828_s1  ;;  %128 = vrot.lane.b32.xlu0 %v898_v2, %s828_s1 }
  0x4c   :  { %134 = vrot.lane.b32.xlu1 %v902_v3, %s828_s1  ;;  %132 = vrot.lane.b32.xlu0 %v896_v1, %s828_s1 }
  0x50   :  { %452 = vrot.lane.b32.xlu1 %v916_v5, %s828_s1  ;;  %450 = vrot.lane.b32.xlu0 %v918_v6, %s828_s1 }
  0x54   :  { %456 = vrot.lane.b32.xlu1 %v922_v7, %s828_s1  ;;  %454 = vrot.lane.b32.xlu0 %v924_v8, %s828_s1 }
  0x58   :  { %156 = vrot.lane.b32.xlu1 %v904_v4, %s829_s19  ;;  %154 = vrot.lane.b32.xlu0 %v898_v2, %s829_s19 }
  0x5c   :  { %160 = vrot.lane.b32.xlu1 %v902_v3, %s829_s19  ;;  %158 = vrot.lane.b32.xlu0 %v896_v1, %s829_s19 }
  0x60   :  { %476 = vrot.lane.b32.xlu1 %v916_v5, %s829_s19  ;;  %474 = vrot.lane.b32.xlu0 %v918_v6, %s829_s19 }
  0x64   :  { %480 = vrot.lane.b32.xlu1 %v922_v7, %s829_s19  ;;  %478 = vrot.lane.b32.xlu0 %v924_v8, %s829_s19 }
  0x68   :  { %195 = vrot.lane.b32.xlu1 %v904_v4, %s830_s20  ;;  %193 = vrot.lane.b32.xlu0 %v898_v2, %s830_s20 }
  0x6c   :  { %199 = vrot.lane.b32.xlu1 %v902_v3, %s830_s20  ;;  %197 = vrot.lane.b32.xlu0 %v896_v1, %s830_s20 }
  0x70   :  { %512 = vrot.lane.b32.xlu1 %v916_v5, %s830_s20  ;;  %510 = vrot.lane.b32.xlu0 %v918_v6, %s830_s20 }
  0x74   :  { %516 = vrot.lane.b32.xlu1 %v922_v7, %s830_s20  ;;  %514 = vrot.lane.b32.xlu0 %v924_v8, %s830_s20 }
  0x78   :  { %221 = vrot.lane.b32.xlu1 %v904_v4, %s831_s21  ;;  %219 = vrot.lane.b32.xlu0 %v898_v2, %s831_s21 }
  0x7c   :  { %225 = vrot.lane.b32.xlu1 %v902_v3, %s831_s21  ;;  %223 = vrot.lane.b32.xlu0 %v896_v1, %s831_s21 }
  0x80   :  { %536 = vrot.lane.b32.xlu1 %v916_v5, %s831_s21  ;;  %534 = vrot.lane.b32.xlu0 %v918_v6, %s831_s21 }
  0x84   :  { %540 = vrot.lane.b32.xlu1 %v922_v7, %s831_s21  ;;  %538 = vrot.lane.b32.xlu0 %v924_v8, %s831_s21 }
  0x88   :  { %58 = vperm.xlu1 %749, %v50_v9   ;;  %53 = vperm.xlu0 %748, %v49_v10  }
  0x8c   :  { %245 = vrot.lane.b32.xlu1 %v898_v2, %s832_s26  ;;  %247 = vrot.lane.b32.xlu0 %v904_v4, %s832_s26 }
  0x90   :  { %249 = vrot.lane.b32.xlu1 %v896_v1, %s832_s26  ;;  %251 = vrot.lane.b32.xlu0 %v902_v3, %s832_s26 }
  0x94   :  { %558 = vrot.lane.b32.xlu1 %v918_v6, %s832_s26  ;;  %560 = vrot.lane.b32.xlu0 %v916_v5, %s832_s26 }
  0x98   :  { %562 = vrot.lane.b32.xlu1 %v924_v8, %s832_s26  ;;  %564 = vrot.lane.b32.xlu0 %v922_v7, %s832_s26 }
  0x9a   :  { %v84_v13 = vpop.permute.xlu1 %83  ;;  %v80_v14 = vpop.permute.xlu0 %79 }
  0x9b   :  { %v90_v15 = vsel %vm89_vm0, %v80_v14, %v84_v13  ;;  %v92_v16 = vsel %vm89_vm0, %v84_v13, %v80_v14 }
  0x9c   :  { %271 = vrot.lane.b32.xlu1 %v898_v2, %s833_s2  ;;  %273 = vrot.lane.b32.xlu0 %v904_v4, %s833_s2  ;;  %v98_v31 = vmul.f32 %v94_v21, %v92_v16  ;;  %v99_v32 = vmul.f32 %v95_v24, %v90_v15 }
  0x9e   :  { %v86_v17 = vpop.permute.xlu1 %85  ;;  %v82_v18 = vpop.permute.xlu0 %81 }
  0x9f   :  { %v91_v19 = vsel %vm89_vm0, %v82_v18, %v86_v17  ;;  %v93_v20 = vsel %vm89_vm0, %v86_v17, %v82_v18 }
  0xa0   :  { %275 = vrot.lane.b32.xlu1 %v896_v1, %s833_s2  ;;  %277 = vrot.lane.b32.xlu0 %v902_v3, %s833_s2  ;;  %v100_v33 = vmul.f32 %v96_v25, %v93_v20  ;;  %v101_v34 = vmul.f32 %v97_v26, %v91_v19 }
  0xa2   :  { %v105_v22 = vpop.permute.xlu1 %104  ;;  %v103_v23 = vpop.permute.xlu0 %102 }
  0xa4   :  { %582 = vrot.lane.b32.xlu1 %v918_v6, %s833_s2  ;;  %584 = vrot.lane.b32.xlu0 %v916_v5, %s833_s2 }
  0xa6   :  { %v109_v35 = vpop.permute.xlu1 %108  ;;  %v107_v36 = vpop.permute.xlu0 %106 }
  0xa7   :  { %v112_v37 = vsel %vm110_vm1, %v105_v22, %v109_v35  ;;  %v114_v38 = vsel %vm110_vm1, %v109_v35, %v105_v22  ;;  %v111_v39 = vsel %vm110_vm1, %v103_v23, %v107_v36  ;;  %v113_v40 = vsel %vm110_vm1, %v107_v36, %v103_v23 }
  0xa8   :  { %v122_v41 = vmul.f32 %v118_v27, %v114_v38  ;;  %v123_v42 = vmul.f32 %v119_v28, %v112_v37  ;;  %v120_v43 = vmul.f32 %v116_v29, %v113_v40  ;;  %v121_v44 = vmul.f32 %v117_v30, %v111_v39  ;;  %586 = vrot.lane.b32.xlu1 %v924_v8, %s833_s2 }
  0xa9   :  { %588 = vrot.lane.b32.xlu0 %v922_v7, %s833_s2 }
  0xaa   :  { %v126_v46 = vadd.f32 %v122_v41, %v100_v33  ;;  %v127_v47 = vadd.f32 %v123_v42, %v101_v34  ;;  %v124_v48 = vadd.f32 %v120_v43, %v98_v31  ;;  %v125_v49 = vadd.f32 %v121_v44, %v99_v32  ;;  %v409_v50 = vpop.permute.xlu1 %408  ;;  %v407_v51 = vpop.permute.xlu0 %406  ;;  %v144_v31 = vld [vmem:[#allocation5 + $0x50] sm:$0xff]  ;;  %v145_v32 = vld [vmem:[#allocation5 + $0x58] sm:$0xff]  ;;  %v142_v33 = vld [vmem:[#allocation5 + $0x40] sm:$0xff] }
  0xab   :  { %v143_v34 = vld [vmem:[#allocation5 + $0x48] sm:$0xff] }
  0xac   :  { %65 = vperm.xlu1 %749, %v61_v45  }
  0xad   :  { %70 = vperm.xlu0 %748, %v62_v52  }
  0xae   :  { %v413_v53 = vpop.permute.xlu1 %412  ;;  %v411_v54 = vpop.permute.xlu0 %410 }
  0xaf   :  { %v415_v55 = vsel %vm89_vm0, %v409_v50, %v413_v53  ;;  %v417_v56 = vsel %vm89_vm0, %v413_v53, %v409_v50  ;;  %v414_v57 = vsel %vm89_vm0, %v407_v51, %v411_v54  ;;  %v416_v58 = vsel %vm89_vm0, %v411_v54, %v407_v51 }
  0xb0   :  { %v424_v62 = vmul.f32 %v417_v56, %v96_v25  ;;  %v425_v63 = vmul.f32 %v415_v55, %v97_v26  ;;  %v422_v0 = vmul.f32 %v416_v58, %v94_v21  ;;  %v423_v9 = vmul.f32 %v414_v57, %v95_v24 }
  0xb2   :  { %v429_v59 = vpop.permute.xlu1 %428  ;;  %v427_v60 = vpop.permute.xlu0 %426 }
  0xb6   :  { %v433_v10 = vpop.permute.xlu1 %432  ;;  %v431_v11 = vpop.permute.xlu0 %430 }
  0xb7   :  { %v435_v13 = vsel %vm110_vm1, %v429_v59, %v433_v10  ;;  %v437_v14 = vsel %vm110_vm1, %v433_v10, %v429_v59  ;;  %v434_v15 = vsel %vm110_vm1, %v427_v60, %v431_v11  ;;  %v436_v16 = vsel %vm110_vm1, %v431_v11, %v427_v60 }
  0xb8   :  { %v444_v17 = vmul.f32 %v437_v14, %v118_v27  ;;  %v445_v18 = vmul.f32 %v435_v13, %v119_v28  ;;  %v442_v19 = vmul.f32 %v436_v16, %v116_v29  ;;  %v443_v20 = vmul.f32 %v434_v15, %v117_v30 }
  0xba   :  { %v448_v21 = vadd.f32 %v444_v17, %v424_v62  ;;  %v449_v22 = vadd.f32 %v445_v18, %v425_v63  ;;  %v446_v23 = vadd.f32 %v442_v19, %v422_v0  ;;  %v447_v24 = vadd.f32 %v443_v20, %v423_v9  ;;  %v131_v25 = vpop.permute.xlu1 %130  ;;  %v129_v26 = vpop.permute.xlu0 %128  ;;  %v170_v0 = vld [vmem:[#allocation5 + $0x70] sm:$0xff]  ;;  %v168_v9 = vld [vmem:[#allocation5 + $0x60] sm:$0xff] }
  0xbe   :  { %v135_v35 = vpop.permute.xlu1 %134  ;;  %v133_v36 = vpop.permute.xlu0 %132 }
  0xbf   :  { %v138_v27 = vsel %vm136_vm2, %v131_v25, %v135_v35  ;;  %v140_v28 = vsel %vm136_vm2, %v135_v35, %v131_v25  ;;  %v137_v29 = vsel %vm136_vm2, %v129_v26, %v133_v36  ;;  %v139_v30 = vsel %vm136_vm2, %v133_v36, %v129_v26 }
  0xc0   :  { %v148_v37 = vmul.f32 %v144_v31, %v140_v28  ;;  %v149_v38 = vmul.f32 %v145_v32, %v138_v27  ;;  %v146_v39 = vmul.f32 %v142_v33, %v139_v30  ;;  %v147_v40 = vmul.f32 %v143_v34, %v137_v29 }
  0xc2   :  { %v152_v41 = vadd.f32 %v148_v37, %v126_v46  ;;  %v1051_v42 = vadd.f32 %v149_v38, %v127_v47  ;;  %v150_v43 = vadd.f32 %v146_v39, %v124_v48  ;;  %v1053_v44 = vadd.f32 %v147_v40, %v125_v49  ;;  %v453_v45 = vpop.permute.xlu1 %452  ;;  %v451_v50 = vpop.permute.xlu0 %450  ;;  %v171_v39 = vld [vmem:[#allocation5 + $0x78] sm:$0xff] }
  0xc6   :  { %v457_v51 = vpop.permute.xlu1 %456  ;;  %v455_v52 = vpop.permute.xlu0 %454 }
  0xc7   :  { %v459_v53 = vsel %vm136_vm2, %v453_v45, %v457_v51  ;;  %v461_v54 = vsel %vm136_vm2, %v457_v51, %v453_v45  ;;  %v458_v55 = vsel %vm136_vm2, %v451_v50, %v455_v52  ;;  %v460_v46 = vsel %vm136_vm2, %v455_v52, %v451_v50  ;;  %v183_v45 = vld [vmem:[#allocation5 + $0x90] sm:$0xff]  ;;  %v184_v50 = vld [vmem:[#allocation5 + $0x98] sm:$0xff] }
  0xc8   :  { %v468_v47 = vmul.f32 %v461_v54, %v144_v31  ;;  %v469_v48 = vmul.f32 %v459_v53, %v145_v32  ;;  %v466_v49 = vmul.f32 %v460_v46, %v142_v33  ;;  %v467_v56 = vmul.f32 %v458_v55, %v143_v34 }
  0xca   :  { %v1063_v57 = vadd.f32 %v468_v47, %v448_v21  ;;  %v1065_v58 = vadd.f32 %v469_v48, %v449_v22  ;;  %v1067_v59 = vadd.f32 %v466_v49, %v446_v23  ;;  %v1069_v60 = vadd.f32 %v467_v56, %v447_v24  ;;  %v157_v62 = vpop.permute.xlu1 %156  ;;  %v155_v63 = vpop.permute.xlu0 %154  ;;  %v181_v49 = vld [vmem:[#allocation5 + $0x80] sm:$0xff]  ;;  %v182_v56 = vld [vmem:[#allocation5 + $0x88] sm:$0xff] }
  0xce   :  { %v161_v10 = vpop.permute.xlu1 %160  ;;  %v159_v11 = vpop.permute.xlu0 %158 }
  0xcf   :  { %v166_v13 = vsel %vm162_vm3, %v161_v10, %v157_v62  ;;  %v165_v14 = vsel %vm162_vm3, %v159_v11, %v155_v63  ;;  %v164_v40 = vsel %vm162_vm3, %v157_v62, %v161_v10  ;;  %v187_v62 = vmul.f32 %v183_v45, %v904_v4 }
  0xd0   :  { %v174_v15 = vmul.f32 %v170_v0, %v166_v13  ;;  %v172_v16 = vmul.f32 %v168_v9, %v165_v14  ;;  %v175_v47 = vmul.f32 %v171_v39, %v164_v40 }
  0xd2   :  { %v1076_v17 = vadd.f32 %v174_v15, %v152_v41  ;;  %v1078_v18 = vadd.f32 %v172_v16, %v150_v43  ;;  %v477_v19 = vpop.permute.xlu1 %476  ;;  %v475_v20 = vpop.permute.xlu0 %474  ;;  %v169_v41 = vld [vmem:[#allocation5 + $0x68] sm:$0xff]  ;;  %v163_v43 = vsel %vm162_vm3, %v155_v63, %v159_v11  ;;  %v188_v63 = vmul.f32 %v184_v50, %v902_v3 }
  0xd3   :  { %v173_v48 = vmul.f32 %v169_v41, %v163_v43  ;;  %v186_v15 = vmul.f32 %v182_v56, %v896_v1  ;;  %v185_v16 = vmul.f32 %v181_v49, %v898_v2  ;;  %v179_v40 = vadd.f32 %v175_v47, %v1051_v42 }
  0xd5   :  { %v177_v43 = vadd.f32 %v173_v48, %v1053_v44 }
  0xd6   :  { %v481_v21 = vpop.permute.xlu1 %480  ;;  %v479_v22 = vpop.permute.xlu0 %478 }
  0xd7   :  { %v483_v51 = vsel %vm162_vm3, %v477_v19, %v481_v21  ;;  %v485_v52 = vsel %vm162_vm3, %v481_v21, %v477_v19  ;;  %v482_v53 = vsel %vm162_vm3, %v475_v20, %v479_v22  ;;  %v484_v54 = vsel %vm162_vm3, %v479_v22, %v475_v20 }
  0xd8   :  { %v492_v10 = vmul.f32 %v485_v52, %v170_v0  ;;  %v493_v11 = vmul.f32 %v483_v51, %v171_v39  ;;  %v490_v13 = vmul.f32 %v484_v54, %v168_v9  ;;  %v491_v14 = vmul.f32 %v482_v53, %v169_v41  ;;  %v210_v39 = vld [vmem:[#allocation5 + $0xb8] sm:$0xff]  ;;  %v208_v51 = vld [vmem:[#allocation5 + $0xa8] sm:$0xff] }
  0xd9   :  { %v504_v19 = vmul.f32 %v916_v5, %v183_v45  ;;  %v505_v20 = vmul.f32 %v922_v7, %v184_v50  ;;  %v502_v0 = vmul.f32 %v918_v6, %v181_v49  ;;  %v503_v9 = vmul.f32 %v924_v8, %v182_v56  ;;  %v207_v50 = vld [vmem:[#allocation5 + $0xa0] sm:$0xff] }
  0xda   :  { %v196_v23 = vpop.permute.xlu1 %195  ;;  %v194_v24 = vpop.permute.xlu0 %193  ;;  %v496_v44 = vadd.f32 %v492_v10, %v1063_v57  ;;  %v497_v53 = vadd.f32 %v493_v11, %v1065_v58  ;;  %v494_v54 = vadd.f32 %v490_v13, %v1067_v59  ;;  %v495_v47 = vadd.f32 %v491_v14, %v1069_v60  ;;  %v285_v6 = vld [vmem:[#allocation5 + $0x100] sm:$0xff] }
  0xdb   :  { %v190_v57 = vadd.f32 %v186_v15, %v177_v43  ;;  %v189_v58 = vadd.f32 %v185_v16, %v1078_v18  ;;  %v234_v43 = vld [vmem:[#allocation5 + $0xc8] sm:$0xff] }
  0xdc   :  { %v508_v10 = vadd.f32 %v504_v19, %v496_v44  ;;  %v509_v59 = vadd.f32 %v505_v20, %v497_v53  ;;  %v506_v11 = vadd.f32 %v502_v0, %v494_v54  ;;  %v507_v60 = vadd.f32 %v503_v9, %v495_v47  ;;  %v261_v53 = vld [vmem:[#allocation5 + $0xf0] sm:$0xff]  ;;  %v262_v54 = vld [vmem:[#allocation5 + $0xf8] sm:$0xff] }
  0xde   :  { %v200_v25 = vpop.permute.xlu1 %199  ;;  %v198_v26 = vpop.permute.xlu0 %197 }
  0xdf   :  { %v203_v41 = vsel %vm201_vm4, %v196_v23, %v200_v25  ;;  %v205_v45 = vsel %vm201_vm4, %v200_v25, %v196_v23  ;;  %v202_v52 = vsel %vm201_vm4, %v194_v24, %v198_v26  ;;  %v204_v42 = vsel %vm201_vm4, %v198_v26, %v194_v24 }
  0xe0   :  { %v213_v48 = vmul.f32 %v209_v61, %v203_v41  ;;  %v214_v49 = vmul.f32 %v210_v39, %v205_v45  ;;  %v211_v56 = vmul.f32 %v207_v50, %v202_v52  ;;  %v212_v7 = vmul.f32 %v208_v51, %v204_v42  ;;  %v259_v42 = vld [vmem:[#allocation5 + $0xe0] sm:$0xff] }
  0xe1   :  { %v191_v24 = vadd.f32 %v187_v62, %v1076_v17  ;;  %v192_v26 = vadd.f32 %v188_v63, %v179_v40  ;;  %v235_v40 = vld [vmem:[#allocation5 + $0xd0] sm:$0xff] }
  0xe2   :  { %v1080_v31 = vpop.permute.xlu1 %512  ;;  %v1082_v32 = vpop.permute.xlu0 %510  ;;  %v215_v19 = vadd.f32 %v211_v56, %v189_v58  ;;  %v216_v20 = vadd.f32 %v212_v7, %v190_v57 }
  0xe3   :  { %v217_v15 = vadd.f32 %v213_v48, %v191_v24  ;;  %v218_v16 = vadd.f32 %v214_v49, %v192_v26 }
  0xe6   :  { %v1084_v33 = vpop.permute.xlu1 %516  ;;  %v1086_v34 = vpop.permute.xlu0 %514 }
  0xe7   :  { %v519_v13 = vsel %vm201_vm4, %v1080_v31, %v1084_v33  ;;  %v521_v14 = vsel %vm201_vm4, %v1084_v33, %v1080_v31  ;;  %v518_v17 = vsel %vm201_vm4, %v1082_v32, %v1086_v34  ;;  %v520_v18 = vsel %vm201_vm4, %v1086_v34, %v1082_v32  ;;  %v236_v31 = vld [vmem:[#allocation5 + $0xd8] sm:$0xff]  ;;  %v233_v34 = vld [vmem:[#allocation5 + $0xc0] sm:$0xff] }
  0xe8   :  { %v528_v9 = vmul.f32 %v519_v13, %v209_v61  ;;  %v529_v41 = vmul.f32 %v521_v14, %v210_v39  ;;  %v526_v45 = vmul.f32 %v518_v17, %v207_v50  ;;  %v527_v52 = vmul.f32 %v520_v18, %v208_v51 }
  0xea   :  { %v1088_v35 = vpop.permute.xlu1 %221  ;;  %v1090_v36 = vpop.permute.xlu0 %219  ;;  %v532_v57 = vadd.f32 %v528_v9, %v508_v10  ;;  %v533_v58 = vadd.f32 %v529_v41, %v509_v59  ;;  %v530_v13 = vadd.f32 %v526_v45, %v506_v11  ;;  %v531_v14 = vadd.f32 %v527_v52, %v507_v60  ;;  %v287_v10 = vld [vmem:[#allocation5 + $0x110] sm:$0xff]  ;;  %v288_v59 = vld [vmem:[#allocation5 + $0x118] sm:$0xff] }
  0xee   :  { %v1092_v27 = vpop.permute.xlu1 %225  ;;  %v1094_v28 = vpop.permute.xlu0 %223 }
  0xef   :  { %v229_v33 = vsel %vm227_vm5, %v1088_v35, %v1092_v27  ;;  %v231_v32 = vsel %vm227_vm5, %v1092_v27, %v1088_v35  ;;  %v228_v0 = vsel %vm227_vm5, %v1090_v36, %v1094_v28  ;;  %v230_v7 = vsel %vm227_vm5, %v1094_v28, %v1090_v36  ;;  %v260_v35 = vld [vmem:[#allocation5 + $0xe8] sm:$0xff] }
  0xf0   :  { %v239_v50 = vmul.f32 %v235_v40, %v229_v33  ;;  %v240_v51 = vmul.f32 %v236_v31, %v231_v32  ;;  %v237_v47 = vmul.f32 %v233_v34, %v228_v0  ;;  %v238_v48 = vmul.f32 %v234_v43, %v230_v7 }
  0xf2   :  { %v1096_v29 = vpop.permute.xlu1 %536  ;;  %v1098_v30 = vpop.permute.xlu0 %534  ;;  %v244_v18 = vadd.f32 %v240_v51, %v218_v16  ;;  %v241_v33 = vadd.f32 %v237_v47, %v215_v19  ;;  %v242_v32 = vadd.f32 %v238_v48, %v216_v20 }
  0xf6   :  { %v1100_v37 = vpop.permute.xlu1 %540  ;;  %v1102_v38 = vpop.permute.xlu0 %538 }
 0x107   :  { %v1116_v55 = vpop.permute.xlu1 %58  ;;  %v1118_v46 = vpop.permute.xlu0 %53 }
 0x10b   :  { %v246_v21 = vpop.permute.xlu1 %245  ;;  %v1127_v22 = vpop.permute.xlu0 %247 }
 0x10f   :  { %v250_v23 = vpop.permute.xlu1 %249  ;;  %v252_v25 = vpop.permute.xlu0 %251 }
 0x110   :  { %v254_v27 = vsel %vm253_vm6, %v246_v21, %v250_v23  ;;  %v256_v44 = vsel %vm253_vm6, %v250_v23, %v246_v21  ;;  %v255_v36 = vsel %vm253_vm6, %v1127_v22, %v252_v25  ;;  %v257_v61 = vsel %vm253_vm6, %v252_v25, %v1127_v22 }
 0x111   :  { %v543_v21 = vsel %vm227_vm5, %v1096_v29, %v1100_v37  ;;  %v545_v23 = vsel %vm227_vm5, %v1100_v37, %v1096_v29  ;;  %v542_v22 = vsel %vm227_vm5, %v1098_v30, %v1102_v38  ;;  %v544_v25 = vsel %vm227_vm5, %v1102_v38, %v1098_v30 }
 0x112   :  { %v263_v49 = vmul.f32 %v259_v42, %v254_v27  ;;  %v264_v56 = vmul.f32 %v260_v35, %v256_v44  ;;  %v265_v24 = vmul.f32 %v261_v53, %v255_v36  ;;  %v266_v26 = vmul.f32 %v262_v54, %v257_v61  ;;  %v286_v36 = vld [vmem:[#allocation5 + $0x108] sm:$0xff] }
 0x113   :  { %v1165_v62 = vpop.permute.xlu1 %558  ;;  %v1167_v63 = vpop.permute.xlu0 %560  ;;  %v243_v37 = vadd.f32 %v239_v50, %v217_v15  ;;  %v552_v0 = vmul.f32 %v543_v21, %v235_v40  ;;  %v553_v7 = vmul.f32 %v545_v23, %v236_v31  ;;  %v550_v5 = vmul.f32 %v542_v22, %v233_v34 }
 0x114   :  { %v551_v8 = vmul.f32 %v544_v25, %v234_v43  ;;  %v267_v30 = vadd.f32 %v263_v49, %v241_v33  ;;  %v268_v38 = vadd.f32 %v264_v56, %v242_v32  ;;  %v270_v44 = vadd.f32 %v266_v26, %v244_v18 }
 0x115   :  { %v269_v27 = vadd.f32 %v265_v24, %v243_v37  ;;  %v556_v23 = vadd.f32 %v552_v0, %v532_v57  ;;  %v557_v22 = vadd.f32 %v553_v7, %v533_v58  ;;  %v554_v25 = vadd.f32 %v550_v5, %v530_v13 }
 0x116   :  { %v555_v49 = vadd.f32 %v551_v8, %v531_v14 }
 0x117   :  { %v563_v28 = vpop.permute.xlu1 %562  ;;  %v565_v39 = vpop.permute.xlu0 %564 }
 0x118   :  { %v566_v11 = vsel %vm253_vm6, %v1165_v62, %v563_v28  ;;  %v568_v60 = vsel %vm253_vm6, %v563_v28, %v1165_v62  ;;  %v567_v15 = vsel %vm253_vm6, %v1167_v63, %v565_v39  ;;  %v569_v16 = vsel %vm253_vm6, %v565_v39, %v1167_v63 }
 0x119   :  { %v574_v52 = vmul.f32 %v566_v11, %v259_v42  ;;  %v575_v63 = vmul.f32 %v568_v60, %v260_v35  ;;  %v576_v61 = vmul.f32 %v567_v15, %v261_v53  ;;  %v577_v28 = vmul.f32 %v569_v16, %v262_v54 }
 0x11b   :  { %v272_v17 = vpop.permute.xlu1 %271  ;;  %v274_v29 = vpop.permute.xlu0 %273  ;;  %v578_v35 = vadd.f32 %v574_v52, %v554_v25  ;;  %v579_v53 = vadd.f32 %v575_v63, %v555_v49  ;;  %v580_v54 = vadd.f32 %v576_v61, %v556_v23 }
 0x11f   :  { %v276_v19 = vpop.permute.xlu1 %275  ;;  %v278_v20 = vpop.permute.xlu0 %277 }
 0x120   :  { %v280_v40 = vsel %vm279_vm7, %v272_v17, %v276_v19  ;;  %v282_v31 = vsel %vm279_vm7, %v276_v19, %v272_v17  ;;  %v281_v34 = vsel %vm279_vm7, %v274_v29, %v278_v20  ;;  %v283_v62 = vsel %vm279_vm7, %v278_v20, %v274_v29 }
 0x121   :  { %v289_v43 = vmul.f32 %v285_v6, %v280_v40  ;;  %v290_v9 = vmul.f32 %v286_v36, %v282_v31  ;;  %v291_v41 = vmul.f32 %v287_v10, %v281_v34  ;;  %v292_v45 = vmul.f32 %v288_v59, %v283_v62 }
 0x122   :  { %v581_v17 = vadd.f32 %v577_v28, %v557_v22 }
 0x123   :  { %v293_v39 = vadd.f32 %v289_v43, %v267_v30  ;;  %v294_v50 = vadd.f32 %v290_v9, %v268_v38  ;;  %v295_v51 = vadd.f32 %v291_v41, %v269_v27  ;;  %v296_v47 = vadd.f32 %v292_v45, %v270_v44  ;;  %v583_v48 = vpop.permute.xlu1 %582  ;;  %v585_v21 = vpop.permute.xlu0 %584 }
 0x125   :  { %v298_v56 = vadd.f32 %v294_v50, %v1118_v46  ;;  %v300_v24 = vadd.f32 %v296_v47, %v1116_v55  ;;  %v297_v26 = vadd.f32 %v293_v39, %v1118_v46  ;;  %v299_v42 = vadd.f32 %v295_v51, %v1116_v55 }
 0x127   :  { %v587_v29 = vpop.permute.xlu1 %586  ;;  %v589_v37 = vpop.permute.xlu0 %588  ;;  %v302_v18 = vmax.f32 %v298_v56, 0.0  ;;  %v304_v33 = vmax.f32 %v300_v24, 0.0  ;;  %v301_v57 = vmax.f32 %v297_v26, 0.0  ;;  %v303_v58 = vmax.f32 %v299_v42, 0.0 }
 0x128   :  { %v590_v5 = vsel %vm279_vm7, %v583_v48, %v587_v29  ;;  %v592_v8 = vsel %vm279_vm7, %v587_v29, %v583_v48  ;;  %v591_v13 = vsel %vm279_vm7, %v585_v21, %v589_v37  ;;  %v593_v14 = vsel %vm279_vm7, %v589_v37, %v585_v21  ;;  %v1301_v29 = vld [vmem:[#allocation14_spill] sm:$0xff] }
 0x129   :  { %v598_v32 = vmul.f32 %v590_v5, %v285_v6  ;;  %v599_v0 = vmul.f32 %v592_v8, %v286_v36  ;;  %v600_v7 = vmul.f32 %v591_v13, %v287_v10  ;;  %v601_v30 = vmul.f32 %v593_v14, %v288_v59  ;;  %v73_v36 = vld [vmem:[%s1286_s3] sm:$0xff] }
 0x12a   :  { %v306_v38 = vmin.f32 %v302_v18, 6.0  ;;  %v308_v27 = vmin.f32 %v304_v33, 6.0  ;;  %v305_v44 = vmin.f32 %v301_v57, 6.0  ;;  %v307_v11 = vmin.f32 %v303_v58, 6.0  ;;  %v1302_v57 = vld [vmem:[#allocation11_spill] sm:$0xff] }
 0x12b   :  { %v602_v60 = vadd.f32 %v598_v32, %v578_v35  ;;  %v603_v15 = vadd.f32 %v599_v0, %v579_v53  ;;  %v604_v16 = vadd.f32 %v600_v7, %v580_v54  ;;  %v605_v19 = vadd.f32 %v601_v30, %v581_v17  ;;  %v66_v28 = vpop.permute.xlu1 %65 }
 0x12c   :  { %v726_v20 = vpack.c.bf16 %v308_v27, %v306_v38  ;;  %v728_v40 = vpack.c.bf16 %v307_v11, %v305_v44  ;;  %v71_v21 = vpop.permute.xlu0 %70 }
 0x12d   :  { %v607_v31 = vadd.f32 %v603_v15, %v1118_v46  ;;  %v609_v34 = vadd.f32 %v605_v19, %v1116_v55  ;;  %v606_v12 = vadd.f32 %v602_v60, %v1118_v46  ;;  %v608_v6 = vadd.f32 %v604_v16, %v1116_v55  ;;  %v74_v55 = vld [vmem:[%s1286_s3 + $0x8] sm:$0xff]  ;;  %s835_s3 = smov [#allocation7]  }
 0x12e   :  { %727 = vmatprep.subr.bf16.mxu0 %v726_v20  ;;  %v1299_v46 = vmov 0.0   ;;  %s709_s11 = sshll.u32 %s835_s3, 4  ;;  %s710_s11 = int_to_ptr.vmem [resolvable:$true] %s709_s11 }
 0x12f   :  { %729 = vmatpush1.bf16.msra.mxu0 %v728_v40  ;;  %v611_v10 = vmax.f32 %v607_v31, 0.0  ;;  %v613_v59 = vmax.f32 %v609_v34, 0.0  ;;  %v610_v62 = vmax.f32 %v606_v12, 0.0  ;;  %v612_v43 = vmax.f32 %v608_v6, 0.0  ;;  %s794_s12 = scalar_lea.vmem %s710_s11, 1024  ;;  %p799_p3 = scmp.lt.s32.totalorder %s710_s11, %s710_s11 }
 0x130   :  { %p795_p2 = scmp.ne.s32.totalorder %s710_s11, %s794_s12  ;;  %p800_p4 = scmp.lt.s32.totalorder %s794_s12, %s794_s12 }
 0x131   :  { %v615_v9 = vmin.f32 %v611_v10, 6.0  ;;  %v617_v41 = vmin.f32 %v613_v59, 6.0  ;;  %v614_v45 = vmin.f32 %v610_v62, 6.0  ;;  %v616_v52 = vmin.f32 %v612_v43, 6.0 }
 0x132   :  { %722 = vmatmul.mubr.msk.f32.vlgmr.msra.gmra.mrb[0].mxu0 %vm309_vm8, %v73_v36  ;;  %p801_p5 = por %p800_p4, %p799_p3 }
 0x133   :  { %386 = vmatprep.mubr.f32.mxu0 %v1299_v46  ;;  %v730_v63 = vpack.c.bf16 %v617_v41, %v615_v9  ;;  %v732_v61 = vpack.c.bf16 %v616_v52, %v614_v45 }
 0x134   :  { %p802_p6 = pnand %p801_p5, %p795_p2 }
 0x135   :  { %731 = vmatprep.subr.bf16.mxu1 %v730_v63 }
 0x136   :  { %723 = vmatmul.mubr.msk.f32.gmra.mrb[2].mxu0 %vm309_vm8, %v74_v55  ;;  %733 = vmatpush1.bf16.msra.mxu1 %v732_v61 }
 0x139   :  { %724 = vmatmul.mubr.msk.f32.vlgmr.msra.gmra.mrb[0].mxu1 %vm309_vm8, %v73_v36 }
 0x13a   :  { %688 = vmatprep.mubr.f32.mxu1 %v1299_v46 }
 0x13d   :  { %725 = vmatmul.mubr.msk.f32.gmra.mrb[2].mxu1 %vm309_vm8, %v74_v55 }
 0x205   :  { %v382_v39 = vpop.f32.mrb[0].mxu0 }
 0x206   :  { %v383_v50 = vadd.f32 %v382_v39, %v66_v28  ;;  %v384_v51 = vpop.f32.mrb[1].mxu0 }
 0x207   :  { %v385_v47 = vadd.f32 %v384_v51, %v66_v28 }
 0x208   :  { %v393_v48 = vadd.f32 %v383_v50, %v898_v2  ;;  %v1300_v2 = vld [vmem:[#allocation12_spill] sm:$0xff] }
 0x209   :  { %v394_v23 = vadd.f32 %v385_v47, %v896_v1  ;;  %v388_v22 = vpop.f32.mrb[2].mxu0 }
 0x20a   :  { %397 = vst [vmem:[#allocation7] sm:$0xff] %v393_v48  ;;  %v389_v25 = vadd.f32 %v388_v22, %v71_v21  ;;  %v390_v49 = vpop.f32.mrb[3].mxu0 }
 0x20b   :  { %398 = vst [vmem:[#allocation7 + $0x8] sm:$0xff] %v394_v23  ;;  %v391_v56 = vadd.f32 %v390_v49, %v71_v21 }
 0x20c   :  { %v395_v24 = vadd.f32 %v389_v25, %v904_v4  ;;  %v684_v26 = vpop.f32.mrb[0].mxu1 }
 0x20d   :  { %v396_v42 = vadd.f32 %v391_v56, %v902_v3  ;;  %v685_v35 = vadd.f32 %v684_v26, %v66_v28  ;;  %v686_v53 = vpop.f32.mrb[1].mxu1  ;;  %v1303_v3 = vld [vmem:[#allocation13_spill] sm:$0xff] }
 0x20e   :  { %399 = vst [vmem:[#allocation7 + $0x10] sm:$0xff] %v395_v24  ;;  %v687_v54 = vadd.f32 %v686_v53, %v66_v28 }
 0x20f   :  { %400 = vst [vmem:[#allocation7 + $0x18] sm:$0xff] %v396_v42  ;;  %v695_v17 = vadd.f32 %v685_v35, %v1300_v2 }
 0x210   :  { %v696_v1 = vadd.f32 %v687_v54, %v1301_v29  ;;  %v690_v37 = vpop.f32.mrb[2].mxu1 }
 0x211   :  { %700 = vst [vmem:[#allocation7 + $0x20] sm:$0xff] %v695_v17  ;;  %v691_v18 = vadd.f32 %v690_v37, %v71_v21  ;;  %v692_v33 = vpop.f32.mrb[3].mxu1 }
 0x212   :  { %701 = vst [vmem:[#allocation7 + $0x28] sm:$0xff] %v696_v1  ;;  %v693_v4 = vadd.f32 %v692_v33, %v71_v21 }
 0x213   :  { %v697_v58 = vadd.f32 %v691_v18, %v1302_v57 }
 0x214   :  { %v698_v5 = vadd.f32 %v693_v4, %v1303_v3 }
 0x215   :  { %702 = vst [vmem:[#allocation7 + $0x30] sm:$0xff] %v697_v58 }
 0x216   :  { %703 = vst [vmem:[#allocation7 + $0x38] sm:$0xff] %v698_v5 }
 0x217   :  { %805 = shalt.err (!%p802_p6)
}
 0x218   :  { %s806_s15 = scalar_lea.hbm %s1288_s5, 1024 }
 0x219   :  { %p807_p7 = scmp.ne.s32.totalorder %s1288_s5, %s806_s15  ;;  %p810_p8 = scmp.lt.u32.totalorder %s806_s15, %s1288_s5 }
 0x21b   :  { %p812_p9 = pnand %p810_p8, %p807_p7 }
 0x21d   :  { %815 = shalt.err (!%p812_p9)
}
 0x21e   :  { %715 = dma.vmem_to_hbm [thread:$0]  %s710_s11, 1024, %s1288_s5, [#allocation4], %s823_s28, %s823_s28, %s824_s29  }
 0x21f   :  { %820 = dma.done.wait [#allocation4], 1024  }
 0x220   :  { %821 = vsyncadd [#allocation4], 4294966272 }
 0x221   :  { %719 = vsyncpa [#allocation3], 1 }
 0x222   :  { %720 = vsyncpa [#allocation6], 1 }
 0x223   :  { %721 = vsyncpa [#allocation4], 1 }

</bundles_post_ra>
